<compile_context>
chip_gen: v7x
topology: tpu7x:2x2x1
jax: 0.10.0
libtpu: 0.0.40
codegen_flags: <defaults>
</compile_context>

<pallas_src>
import jax
import jax.numpy as jnp
from jax.experimental import pallas as pl
from jax.experimental.pallas import tpu as pltpu

_VMEM_TILE_BUDGET = 40 * 1024 * 1024  # safe under v7x's 64 MiB physical VMEM


def _round_up(n, m):
    return ((n + m - 1) // m) * m


def _lane_pad(n):
    return _round_up(max(n, 1), 128)


def _num_tensorcores():
    """2 on v7x-class parts (2 TensorCores / chip), 1 on v5e / v6e."""
    try:
        kind = jax.devices()[0].device_kind.lower()
        if "v7" in kind:
            return 2
    except Exception:
        pass
    return 1


def autoencoder_kernel(x_ref,
                       w1, b1, w2, b2, w3, b3,      # encoder params
                       w4, b4, w5, b5, w6, b6,      # decoder params
                       enc_ref, dec_ref):
    x = x_ref[...]

    # ---- encoder: (Linear + ReLU) x 3, f32 MXU accumulation ----
    h = jnp.maximum(jnp.dot(x, w1[...], preferred_element_type=jnp.float32) + b1[...], 0.0)
    h = jnp.maximum(jnp.dot(h, w2[...], preferred_element_type=jnp.float32) + b2[...], 0.0)
    enc = jnp.maximum(jnp.dot(h, w3[...], preferred_element_type=jnp.float32) + b3[...], 0.0)
    enc_ref[...] = enc.astype(enc_ref.dtype)         # narrow (tile_b, 16) store

    # ---- decoder: (Linear + ReLU) x 2 + Linear ----
    d = jnp.maximum(jnp.dot(enc, w4[...], preferred_element_type=jnp.float32) + b4[...], 0.0)
    d = jnp.maximum(jnp.dot(d, w5[...], preferred_element_type=jnp.float32) + b5[...], 0.0)
    d = jnp.dot(d, w6[...], preferred_element_type=jnp.float32) + b6[...]
    dec_ref[...] = d.astype(dec_ref.dtype)            # narrow (tile_b, F) store


def _vmem_estimate_bytes(tile_b, f):
    """Per-step VMEM footprint (lane-padded layouts, double-buffered)."""
    fp = _lane_pad(f)
    blocks = 2 * 4 * tile_b * (fp + _lane_pad(16) + fp)          # x, enc, dec blocks
    weights = 2 * 4 * (_round_up(f, 8) * 128 + 64 * 128 + 32 * 128 +
                       16 * 128 + 32 * 128 + 64 * fp)            # resident weights
    biases = 2 * 4 * (5 * 128 + fp)
    return blocks + weights + biases


def autoencoder_forward(x, params, *, tile_b=2048):
    """x: [B, F] float32. params: transposed weights [in,out] + biases [1,out].
    Returns (encoded [B,16], decoded [B,F])."""
    B, F = x.shape
    B8 = _round_up(B, 8)

    # ---- pick a batch tile: large, multiple of 8, fits the VMEM budget ----
    tile_b = max(8, min(_round_up(tile_b, 8), B8))
    while tile_b > 8 and _vmem_estimate_bytes(tile_b, F) > _VMEM_TILE_BUDGET:
        tile_b = max(8, _round_up(tile_b // 2, 8))

    # ---- v7x only: give the two TensorCores an even number of grid steps ----
    if _num_tensorcores() >= 2 and B8 > 8:
        n_steps = -(-B8 // tile_b)
        if n_steps < 2:
            n_steps = 2
        if n_steps % 2:
            n_steps += 1
        tile_b = max(8, _round_up(-(-B8 // n_steps), 8))

    B_pad = _round_up(B8, tile_b)
    grid = (B_pad // tile_b,)

    # Batch padding only; the feature dim keeps its natural width F, so the
    # kernel moves exactly the useful bytes (no wrapper pad / slice passes
    # unless the batch itself is ragged).
    x_pad = x.astype(jnp.float32)
    if B_pad != B:
        x_pad = jnp.pad(x_pad, ((0, B_pad - B), (0, 0)))

    w1, b1 = params["w1"], params["b1"]
    w2, b2 = params["w2"], params["b2"]
    w3, b3 = params["w3"], params["b3"]
    w4, b4 = params["w4"], params["b4"]
    w5, b5 = params["w5"], params["b5"]
    w6, b6 = params["w6"], params["b6"]

    def full_spec(arr):
        # whole (tiny) array resident at a constant block index -> fetched once
        return pl.BlockSpec(arr.shape, lambda i: (0,) * arr.ndim)

    vmem_limit = int(min(48 * 1024 * 1024,
                         max(_vmem_estimate_bytes(tile_b, F) + (4 << 20), 16 << 20)))

    enc_pad, dec_pad = pl.pallas_call(
        autoencoder_kernel,
        out_shape=(
            jax.ShapeDtypeStruct((B_pad, 16), jnp.float32),
            jax.ShapeDtypeStruct((B_pad, F), jnp.float32),
        ),
        grid_spec=pltpu.PrefetchScalarGridSpec(
            num_scalar_prefetch=0,
            grid=grid,
            in_specs=[
                pl.BlockSpec((tile_b, F), lambda i: (i, 0)),
                full_spec(w1), full_spec(b1),
                full_spec(w2), full_spec(b2),
                full_spec(w3), full_spec(b3),
                full_spec(w4), full_spec(b4),
                full_spec(w5), full_spec(b5),
                full_spec(w6), full_spec(b6),
            ],
            out_specs=[
                pl.BlockSpec((tile_b, 16), lambda i: (i, 0)),
                pl.BlockSpec((tile_b, F), lambda i: (i, 0)),
            ],
        ),
        compiler_params=pltpu.CompilerParams(
            dimension_semantics=("parallel",),
            vmem_limit_bytes=vmem_limit),
    )(x_pad, w1, b1, w2, b2, w3, b3, w4, b4, w5, b5, w6, b6)

    if B_pad != B:
        return enc_pad[:B], dec_pad[:B]
    return enc_pad, dec_pad


def init_params(key, input_size):
    """Deterministic PyTorch-style (Kaiming-uniform-ish) init.
    Weights are stored transposed: [in_features, out_features]."""
    dims = [(input_size, 64), (64, 32), (32, 16),
            (16, 32), (32, 64), (64, input_size)]
    params = {}
    for idx, (fin, fout) in enumerate(dims, start=1):
        key, kw, kb = jax.random.split(key, 3)
        bound = 1.0 / jnp.sqrt(fin)
        params[f"w{idx}"] = jax.random.uniform(
            kw, (fin, fout), jnp.float32, minval=-bound, maxval=bound)
        params[f"b{idx}"] = jax.random.uniform(
            kb, (1, fout), jnp.float32, minval=-bound, maxval=bound)
    return params


def reference_forward(x, params):
    """Pure-JAX reference matching PyTorch semantics."""
    h = jnp.maximum(x @ params["w1"] + params["b1"], 0.0)
    h = jnp.maximum(h @ params["w2"] + params["b2"], 0.0)
    enc = jnp.maximum(h @ params["w3"] + params["b3"], 0.0)
    d = jnp.maximum(enc @ params["w4"] + params["b4"], 0.0)
    d = jnp.maximum(d @ params["w5"] + params["b5"], 0.0)
    dec = d @ params["w6"] + params["b6"]
    return enc, dec


if __name__ == "__main__":
    input_size = 32   # stand-in for X_train.shape[1]
    batch = 64        # small demo batch (kernel tiles internally)

    key = jax.random.PRNGKey(0)
    kx, kp = jax.random.split(key)
    x = jax.random.normal(kx, (batch, input_size), jnp.float32)
    params = init_params(kp, input_size)

    enc, dec = autoencoder_forward(x, params)
    jax.block_until_ready((enc, dec))

    enc_ref, dec_ref = reference_forward(x, params)
    assert enc.shape == (batch, 16) and dec.shape == (batch, input_size)
    assert jnp.allclose(enc, enc_ref, atol=1e-5, rtol=1e-5)
    assert jnp.allclose(dec, dec_ref, atol=1e-5, rtol=1e-5)

    print("KERNEL_OK")
</pallas_src>

<mosaic_0001>
module attributes {stable_mosaic.version = 11 : i64} {
  func.func @autoencoder_kernel(%arg0: i32, %arg1: memref<64x32xf32, #tpu.memory_space<vmem>>, %arg2: memref<32x64xf32, #tpu.memory_space<vmem>>, %arg3: memref<1x64xf32, #tpu.memory_space<vmem>>, %arg4: memref<64x32xf32, #tpu.memory_space<vmem>>, %arg5: memref<1x32xf32, #tpu.memory_space<vmem>>, %arg6: memref<32x16xf32, #tpu.memory_space<vmem>>, %arg7: memref<1x16xf32, #tpu.memory_space<vmem>>, %arg8: memref<16x32xf32, #tpu.memory_space<vmem>>, %arg9: memref<1x32xf32, #tpu.memory_space<vmem>>, %arg10: memref<32x64xf32, #tpu.memory_space<vmem>>, %arg11: memref<1x64xf32, #tpu.memory_space<vmem>>, %arg12: memref<64x32xf32, #tpu.memory_space<vmem>>, %arg13: memref<1x32xf32, #tpu.memory_space<vmem>>, %arg14: memref<64x16xf32, #tpu.memory_space<vmem>>, %arg15: memref<64x32xf32, #tpu.memory_space<vmem>>) attributes {dimension_semantics = [#tpu.dimension_semantics<parallel>], iteration_bounds = array<i64: 1>, scalar_prefetch = 0 : i64, scratch_operands = 0 : i64, tpu.core_type = #tpu.core_type<tc>, window_params = [{transform_indices = @transform_0, window_bounds = array<i64: 64, 32>}, {pipeline_mode = #tpu.pipeline_mode<synchronous>, transform_indices = @transform_1, window_bounds = array<i64: 32, 64>}, {pipeline_mode = #tpu.pipeline_mode<synchronous>, transform_indices = @transform_2, window_bounds = array<i64: 1, 64>}, {pipeline_mode = #tpu.pipeline_mode<synchronous>, transform_indices = @transform_3, window_bounds = array<i64: 64, 32>}, {pipeline_mode = #tpu.pipeline_mode<synchronous>, transform_indices = @transform_4, window_bounds = array<i64: 1, 32>}, {pipeline_mode = #tpu.pipeline_mode<synchronous>, transform_indices = @transform_5, window_bounds = array<i64: 32, 16>}, {pipeline_mode = #tpu.pipeline_mode<synchronous>, transform_indices = @transform_6, window_bounds = array<i64: 1, 16>}, {pipeline_mode = #tpu.pipeline_mode<synchronous>, transform_indices = @transform_7, window_bounds = array<i64: 16, 32>}, {pipeline_mode = #tpu.pipeline_mode<synchronous>, transform_indices = @transform_8, window_bounds = array<i64: 1, 32>}, {pipeline_mode = #tpu.pipeline_mode<synchronous>, transform_indices = @transform_9, window_bounds = array<i64: 32, 64>}, {pipeline_mode = #tpu.pipeline_mode<synchronous>, transform_indices = @transform_10, window_bounds = array<i64: 1, 64>}, {pipeline_mode = #tpu.pipeline_mode<synchronous>, transform_indices = @transform_11, window_bounds = array<i64: 64, 32>}, {pipeline_mode = #tpu.pipeline_mode<synchronous>, transform_indices = @transform_12, window_bounds = array<i64: 1, 32>}, {transform_indices = @transform_13, window_bounds = array<i64: 64, 16>}, {transform_indices = @transform_14, window_bounds = array<i64: 64, 32>}]} {
    %c0 = arith.constant 0 : index
    %c0_0 = arith.constant 0 : index
    %0 = vector.load %arg1[%c0, %c0_0] : memref<64x32xf32, #tpu.memory_space<vmem>>, vector<64x32xf32>
    %c0_1 = arith.constant 0 : index
    %c0_2 = arith.constant 0 : index
    %1 = vector.load %arg2[%c0_1, %c0_2] : memref<32x64xf32, #tpu.memory_space<vmem>>, vector<32x64xf32>
    %cst = arith.constant dense<0.000000e+00> : vector<64x64xf32>
    %2 = tpu.matmul %0, %1, %cst {dimension_numbers = #tpu.dot_dimension_numbers<[1], [0], [0], [1], [0, 0, 1, 1], [], []>} : vector<64x32xf32>, vector<32x64xf32>, vector<64x64xf32> -> vector<64x64xf32>
    %c0_3 = arith.constant 0 : index
    %c0_4 = arith.constant 0 : index
    %3 = vector.load %arg3[%c0_3, %c0_4] : memref<1x64xf32, #tpu.memory_space<vmem>>, vector<1x64xf32>
    %4 = vector.broadcast %3 : vector<1x64xf32> to vector<64x64xf32>
    %5 = arith.addf %2, %4 : vector<64x64xf32>
    %cst_5 = arith.constant 0.000000e+00 : f32
    %6 = vector.broadcast %cst_5 : f32 to vector<64x64xf32>
    %7 = arith.maximumf %5, %6 : vector<64x64xf32>
    %c0_6 = arith.constant 0 : index
    %c0_7 = arith.constant 0 : index
    %8 = vector.load %arg4[%c0_6, %c0_7] : memref<64x32xf32, #tpu.memory_space<vmem>>, vector<64x32xf32>
    %cst_8 = arith.constant dense<0.000000e+00> : vector<64x32xf32>
    %9 = tpu.matmul %7, %8, %cst_8 {dimension_numbers = #tpu.dot_dimension_numbers<[1], [0], [0], [1], [0, 0, 1, 1], [], []>} : vector<64x64xf32>, vector<64x32xf32>, vector<64x32xf32> -> vector<64x32xf32>
    %c0_9 = arith.constant 0 : index
    %c0_10 = arith.constant 0 : index
    %10 = vector.load %arg5[%c0_9, %c0_10] : memref<1x32xf32, #tpu.memory_space<vmem>>, vector<1x32xf32>
    %11 = vector.broadcast %10 : vector<1x32xf32> to vector<64x32xf32>
    %12 = arith.addf %9, %11 : vector<64x32xf32>
    %cst_11 = arith.constant 0.000000e+00 : f32
    %13 = vector.broadcast %cst_11 : f32 to vector<64x32xf32>
    %14 = arith.maximumf %12, %13 : vector<64x32xf32>
    %c0_12 = arith.constant 0 : index
    %c0_13 = arith.constant 0 : index
    %15 = vector.load %arg6[%c0_12, %c0_13] : memref<32x16xf32, #tpu.memory_space<vmem>>, vector<32x16xf32>
    %cst_14 = arith.constant dense<0.000000e+00> : vector<64x16xf32>
    %16 = tpu.matmul %14, %15, %cst_14 {dimension_numbers = #tpu.dot_dimension_numbers<[1], [0], [0], [1], [0, 0, 1, 1], [], []>} : vector<64x32xf32>, vector<32x16xf32>, vector<64x16xf32> -> vector<64x16xf32>
    %c0_15 = arith.constant 0 : index
    %c0_16 = arith.constant 0 : index
    %17 = vector.load %arg7[%c0_15, %c0_16] : memref<1x16xf32, #tpu.memory_space<vmem>>, vector<1x16xf32>
    %18 = vector.broadcast %17 : vector<1x16xf32> to vector<64x16xf32>
    %19 = arith.addf %16, %18 : vector<64x16xf32>
    %cst_17 = arith.constant 0.000000e+00 : f32
    %20 = vector.broadcast %cst_17 : f32 to vector<64x16xf32>
    %21 = arith.maximumf %19, %20 : vector<64x16xf32>
    %c0_18 = arith.constant 0 : index
    %c0_19 = arith.constant 0 : index
    %22 = vector.load %arg14[%c0_18, %c0_19] : memref<64x16xf32, #tpu.memory_space<vmem>>, vector<64x16xf32>
    tpu.vector_store %arg14[%c0_18, %c0_19], %21 {strides = array<i32>} : memref<64x16xf32, #tpu.memory_space<vmem>>, vector<64x16xf32>,
    %c0_20 = arith.constant 0 : index
    %c0_21 = arith.constant 0 : index
    %23 = vector.load %arg8[%c0_20, %c0_21] : memref<16x32xf32, #tpu.memory_space<vmem>>, vector<16x32xf32>
    %cst_22 = arith.constant dense<0.000000e+00> : vector<64x32xf32>
    %24 = tpu.matmul %21, %23, %cst_22 {dimension_numbers = #tpu.dot_dimension_numbers<[1], [0], [0], [1], [0, 0, 1, 1], [], []>} : vector<64x16xf32>, vector<16x32xf32>, vector<64x32xf32> -> vector<64x32xf32>
    %c0_23 = arith.constant 0 : index
    %c0_24 = arith.constant 0 : index
    %25 = vector.load %arg9[%c0_23, %c0_24] : memref<1x32xf32, #tpu.memory_space<vmem>>, vector<1x32xf32>
    %26 = vector.broadcast %25 : vector<1x32xf32> to vector<64x32xf32>
    %27 = arith.addf %24, %26 : vector<64x32xf32>
    %cst_25 = arith.constant 0.000000e+00 : f32
    %28 = vector.broadcast %cst_25 : f32 to vector<64x32xf32>
    %29 = arith.maximumf %27, %28 : vector<64x32xf32>
    %c0_26 = arith.constant 0 : index
    %c0_27 = arith.constant 0 : index
    %30 = vector.load %arg10[%c0_26, %c0_27] : memref<32x64xf32, #tpu.memory_space<vmem>>, vector<32x64xf32>
    %cst_28 = arith.constant dense<0.000000e+00> : vector<64x64xf32>
    %31 = tpu.matmul %29, %30, %cst_28 {dimension_numbers = #tpu.dot_dimension_numbers<[1], [0], [0], [1], [0, 0, 1, 1], [], []>} : vector<64x32xf32>, vector<32x64xf32>, vector<64x64xf32> -> vector<64x64xf32>
    %c0_29 = arith.constant 0 : index
    %c0_30 = arith.constant 0 : index
    %32 = vector.load %arg11[%c0_29, %c0_30] : memref<1x64xf32, #tpu.memory_space<vmem>>, vector<1x64xf32>
    %33 = vector.broadcast %32 : vector<1x64xf32> to vector<64x64xf32>
    %34 = arith.addf %31, %33 : vector<64x64xf32>
    %cst_31 = arith.constant 0.000000e+00 : f32
    %35 = vector.broadcast %cst_31 : f32 to vector<64x64xf32>
    %36 = arith.maximumf %34, %35 : vector<64x64xf32>
    %c0_32 = arith.constant 0 : index
    %c0_33 = arith.constant 0 : index
    %37 = vector.load %arg12[%c0_32, %c0_33] : memref<64x32xf32, #tpu.memory_space<vmem>>, vector<64x32xf32>
    %cst_34 = arith.constant dense<0.000000e+00> : vector<64x32xf32>
    %38 = tpu.matmul %36, %37, %cst_34 {dimension_numbers = #tpu.dot_dimension_numbers<[1], [0], [0], [1], [0, 0, 1, 1], [], []>} : vector<64x64xf32>, vector<64x32xf32>, vector<64x32xf32> -> vector<64x32xf32>
    %c0_35 = arith.constant 0 : index
    %c0_36 = arith.constant 0 : index
    %39 = vector.load %arg13[%c0_35, %c0_36] : memref<1x32xf32, #tpu.memory_space<vmem>>, vector<1x32xf32>
    %40 = vector.broadcast %39 : vector<1x32xf32> to vector<64x32xf32>
    %41 = arith.addf %38, %40 : vector<64x32xf32>
    %c0_37 = arith.constant 0 : index
    %c0_38 = arith.constant 0 : index
    %42 = vector.load %arg15[%c0_37, %c0_38] : memref<64x32xf32, #tpu.memory_space<vmem>>, vector<64x32xf32>
    tpu.vector_store %arg15[%c0_37, %c0_38], %41 {strides = array<i32>} : memref<64x32xf32, #tpu.memory_space<vmem>>, vector<64x32xf32>,
    return
  }
  func.func @transform_0(%arg0: i32) -> (i32, i32) {
    %c0_i32 = arith.constant 0 : i32
    %c0_i32_0 = arith.constant 0 : i32
    return %arg0, %c0_i32 : i32, i32
  }
  func.func @transform_1(%arg0: i32) -> (i32, i32) {
    %c0_i32 = arith.constant 0 : i32
    %c0_i32_0 = arith.constant 0 : i32
    %c0_i32_1 = arith.constant 0 : i32
    return %c0_i32, %c0_i32_0 : i32, i32
  }
  func.func @transform_2(%arg0: i32) -> (i32, i32) {
    %c0_i32 = arith.constant 0 : i32
    %c0_i32_0 = arith.constant 0 : i32
    %c0_i32_1 = arith.constant 0 : i32
    return %c0_i32, %c0_i32_0 : i32, i32
  }
  func.func @transform_3(%arg0: i32) -> (i32, i32) {
    %c0_i32 = arith.constant 0 : i32
    %c0_i32_0 = arith.constant 0 : i32
    %c0_i32_1 = arith.constant 0 : i32
    return %c0_i32, %c0_i32_0 : i32, i32
  }
  func.func @transform_4(%arg0: i32) -> (i32, i32) {
    %c0_i32 = arith.constant 0 : i32
    %c0_i32_0 = arith.constant 0 : i32
    %c0_i32_1 = arith.constant 0 : i32
    return %c0_i32, %c0_i32_0 : i32, i32
  }
  func.func @transform_5(%arg0: i32) -> (i32, i32) {
    %c0_i32 = arith.constant 0 : i32
    %c0_i32_0 = arith.constant 0 : i32
    %c0_i32_1 = arith.constant 0 : i32
    return %c0_i32, %c0_i32_0 : i32, i32
  }
  func.func @transform_6(%arg0: i32) -> (i32, i32) {
    %c0_i32 = arith.constant 0 : i32
    %c0_i32_0 = arith.constant 0 : i32
    %c0_i32_1 = arith.constant 0 : i32
    return %c0_i32, %c0_i32_0 : i32, i32
  }
  func.func @transform_7(%arg0: i32) -> (i32, i32) {
    %c0_i32 = arith.constant 0 : i32
    %c0_i32_0 = arith.constant 0 : i32
    %c0_i32_1 = arith.constant 0 : i32
    return %c0_i32, %c0_i32_0 : i32, i32
  }
  func.func @transform_8(%arg0: i32) -> (i32, i32) {
    %c0_i32 = arith.constant 0 : i32
    %c0_i32_0 = arith.constant 0 : i32
    %c0_i32_1 = arith.constant 0 : i32
    return %c0_i32, %c0_i32_0 : i32, i32
  }
  func.func @transform_9(%arg0: i32) -> (i32, i32) {
    %c0_i32 = arith.constant 0 : i32
    %c0_i32_0 = arith.constant 0 : i32
    %c0_i32_1 = arith.constant 0 : i32
    return %c0_i32, %c0_i32_0 : i32, i32
  }
  func.func @transform_10(%arg0: i32) -> (i32, i32) {
    %c0_i32 = arith.constant 0 : i32
    %c0_i32_0 = arith.constant 0 : i32
    %c0_i32_1 = arith.constant 0 : i32
    return %c0_i32, %c0_i32_0 : i32, i32
  }
  func.func @transform_11(%arg0: i32) -> (i32, i32) {
    %c0_i32 = arith.constant 0 : i32
    %c0_i32_0 = arith.constant 0 : i32
    %c0_i32_1 = arith.constant 0 : i32
    return %c0_i32, %c0_i32_0 : i32, i32
  }
  func.func @transform_12(%arg0: i32) -> (i32, i32) {
    %c0_i32 = arith.constant 0 : i32
    %c0_i32_0 = arith.constant 0 : i32
    %c0_i32_1 = arith.constant 0 : i32
    return %c0_i32, %c0_i32_0 : i32, i32
  }
  func.func @transform_13(%arg0: i32) -> (i32, i32) {
    %c0_i32 = arith.constant 0 : i32
    %c0_i32_0 = arith.constant 0 : i32
    return %arg0, %c0_i32 : i32, i32
  }
  func.func @transform_14(%arg0: i32) -> (i32, i32) {
    %c0_i32 = arith.constant 0 : i32
    %c0_i32_0 = arith.constant 0 : i32
    return %arg0, %c0_i32 : i32, i32
  }
}

</mosaic_0001>

<bundles_post_ra>
// kernel: tpu_custom_call.1
= control target key start
LH: loop header
LB: loop body
LE: loop exit
PB: predicated region body
PF: predicated region fallthrough
CT: control target
= control target key end

     0   :  { %vm65_vm0 = vcmask 261120   ;;  %vm218_vm1 = vcmask 523264   ;;  %vm504_vm2 = vcmask 130048   ;;  %s1618_s1 = inlined_call_operand.vmem [shape: f32[32,64], index: 1, kind: input, shape index: {}]   ;;  %s1619_s0 = inlined_call_operand.vmem [shape: f32[64,32], index: 0, kind: input, shape index: {}]   ;;  %s1620_s3 = inlined_call_operand.vmem [shape: f32[64,32], index: 3, kind: input, shape index: {}]   ;;  %s1621_s5 = inlined_call_operand.vmem [shape: f32[32,16], index: 5, kind: input, shape index: {}]   ;;  %s1622_s2 = inlined_call_operand.vmem [shape: f32[1,64], index: 2, kind: input, shape index: {}]   ;;  %s1623_s7 = inlined_call_operand.vmem [shape: f32[16,32], index: 7, kind: input, shape index: {}]   ;;  %s1624_s4 = inlined_call_operand.vmem [shape: f32[1,32], index: 4, kind: input, shape index: {}]   ;;  %s1625_s9 = inlined_call_operand.vmem [shape: f32[32,64], index: 9, kind: input, shape index: {}]   ;;  %s1626_s6 = inlined_call_operand.vmem [shape: f32[1,16], index: 6, kind: input, shape index: {}]   ;;  %s1627_s13 = inlined_call_operand.vmem [shape: f32[64,16], index: 13, kind: output, shape index: {0}]   ;;  %s1628_s11 = inlined_call_operand.vmem [shape: f32[64,32], index: 11, kind: input, shape index: {}]   ;;  %s1629_s8 = inlined_call_operand.vmem [shape: f32[1,32], index: 8, kind: input, shape index: {}]   ;;  %s1630_s10 = inlined_call_operand.vmem [shape: f32[1,64], index: 10, kind: input, shape index: {}]   ;;  %s1631_s12 = inlined_call_operand.vmem [shape: f32[1,32], index: 12, kind: input, shape index: {}]   ;;  %s1632_s14 = inlined_call_operand.vmem [shape: f32[64,32], index: 14, kind: output, shape index: {1}]  }
   0x1   :  { %v54_v0 = vld [vmem:[%s1618_s1] sm:$0xff]  ;;  %v55_v1 = vld [vmem:[%s1618_s1 + $0x8] sm:$0xff]  ;;  %v56_v2 = vld [vmem:[%s1618_s1 + $0x10] sm:$0xff] }
   0x2   :  { %v1231_v3 = vpack.c.bf16 %v55_v1, %v54_v0  ;;  %v57_v4 = vld [vmem:[%s1618_s1 + $0x18] sm:$0xff]  ;;  %v46_v5 = vld [vmem:[%s1619_s0] sm:$0xff]  ;;  %v204_v8 = vld [vmem:[%s1620_s3 + $0x8] sm:$0xff] }
   0x3   :  { %v1235_v6 = vpack.c.bf16 %v57_v4, %v56_v2  ;;  %1107 = vmatprep.mubr.msk.f32.mxu0 %vm65_vm0, %v46_v5  ;;  %v203_v7 = vld [vmem:[%s1620_s3] sm:$0xff]  ;;  %v205_v9 = vld [vmem:[%s1620_s3 + $0x10] sm:$0xff]  ;;  %v206_v11 = vld [vmem:[%s1620_s3 + $0x18] sm:$0xff] }
   0x4   :  { %1232 = vmatprep.subr.bf16.mxu0 %v1231_v3  ;;  %v1239_v10 = vpack.c.bf16 %v204_v8, %v203_v7  ;;  %v1243_v12 = vpack.c.bf16 %v206_v11, %v205_v9  ;;  %v207_v13 = vld [vmem:[%s1620_s3 + $0x20] sm:$0xff]  ;;  %v208_v14 = vld [vmem:[%s1620_s3 + $0x28] sm:$0xff]  ;;  %v48_v16 = vld [vmem:[%s1619_s0 + $0x10] sm:$0xff] }
   0x5   :  { %1234 = vmatpush3.bf16.msra.mxu0 %v1231_v3  ;;  %v47_v15 = vld [vmem:[%s1619_s0 + $0x8] sm:$0xff]  ;;  %v1247_v17 = vpack.c.bf16 %v208_v14, %v207_v13  ;;  %v49_v18 = vld [vmem:[%s1619_s0 + $0x18] sm:$0xff]  ;;  %v50_v19 = vld [vmem:[%s1619_s0 + $0x20] sm:$0xff] }
   0x6   :  { %1236 = vmatprep.subr.bf16.mxu0 %v1235_v6  ;;  %1240 = vmatprep.subr.bf16.mxu1 %v1239_v10  ;;  %v51_v20 = vld [vmem:[%s1619_s0 + $0x28] sm:$0xff]  ;;  %v52_v21 = vld [vmem:[%s1619_s0 + $0x30] sm:$0xff]  ;;  %v53_v22 = vld [vmem:[%s1619_s0 + $0x38] sm:$0xff] }
   0x7   :  { %1242 = vmatpush3.bf16.msra.mxu1 %v1239_v10  ;;  %v209_v23 = vld [vmem:[%s1620_s3 + $0x30] sm:$0xff]  ;;  %v210_v24 = vld [vmem:[%s1620_s3 + $0x38] sm:$0xff]  ;;  %v356_v26 = vld [vmem:[%s1621_s5] sm:$0xff] }
   0x8   :  { %1244 = vmatprep.subr.bf16.mxu1 %v1243_v12  ;;  %v1251_v25 = vpack.c.bf16 %v210_v24, %v209_v23  ;;  %v357_v27 = vld [vmem:[%s1621_s5 + $0x8] sm:$0xff]  ;;  %v358_v28 = vld [vmem:[%s1621_s5 + $0x10] sm:$0xff]  ;;  %v359_v30 = vld [vmem:[%s1621_s5 + $0x18] sm:$0xff] }
   0x9   :  { %1238 = vmatpush3.bf16.msra.mxu0 %v1235_v6  ;;  %v1255_v29 = vpack.c.bf16 %v357_v27, %v356_v26  ;;  %v1259_v31 = vpack.c.bf16 %v359_v30, %v358_v28  ;;  %v967_v32 = vld [vmem:[%s1622_s2] ss:$0 sm:$0xff]  ;;  %v514_v58 = vld [vmem:[%s1623_s7 + $0x8] sm:$0xff]  ;;  %v661_v23 = vld [vmem:[%s1625_s9 + $0x10] sm:$0xff] }
   0xa   :  { %v513_v57 = vld [vmem:[%s1623_s7] sm:$0xff] }
   0xb   :  { %1246 = vmatpush3.bf16.msra.mxu1 %v1243_v12  ;;  %1256 = vmatprep.subr.bf16.mxu0 %v1255_v29  ;;  %v1263_v59 = vpack.c.bf16 %v514_v58, %v513_v57  ;;  %v976_v60 = vld [vmem:[%s1624_s4] ss:$0 sm:$0xff] }
   0xc   :  { %1108 = vmatmul.mubr.msk.f32.vlgmr.msra.gmra.mrb[0].mxu0 %vm65_vm0, %v47_v15  ;;  %1248 = vmatprep.subr.bf16.mxu1 %v1247_v17  ;;  %v985_v27 = vld [vmem:[%s1626_s6] ss:$0 sm:$0xff] }
   0xd   :  { %1110 = vmatprep.mubr.msk.f32.mxu0 %vm65_vm0, %v48_v16  ;;  %1258 = vmatpush3.bf16.msra.mxu0 %v1255_v29  ;;  %v811_v58 = vld [vmem:[%s1628_s11 + $0x20] sm:$0xff] }
   0xe   :  { %1260 = vmatprep.subr.bf16.mxu0 %v1259_v31 }
   0xf   :  { %1250 = vmatpush3.bf16.msra.mxu1 %v1247_v17 }
  0x10   :  { %1111 = vmatmul.mubr.msk.f32.gmra.mrb[2].mxu0 %vm65_vm0, %v49_v18  ;;  %1252 = vmatprep.subr.bf16.mxu1 %v1251_v25 }
  0x11   :  { %1113 = vmatprep.mubr.msk.f32.mxu0 %vm65_vm0, %v50_v19  ;;  %1262 = vmatpush3.bf16.msra.mxu0 %v1259_v31 }
  0x13   :  { %1254 = vmatpush3.bf16.msra.mxu1 %v1251_v25  ;;  %v662_v25 = vld [vmem:[%s1625_s9 + $0x18] sm:$0xff] }
  0x14   :  { %1114 = vmatmul.mubr.msk.f32.gmra.mrb[4].mxu0 %vm65_vm0, %v51_v20  ;;  %1264 = vmatprep.subr.bf16.mxu1 %v1263_v59  ;;  %v1271_v26 = vpack.c.bf16 %v662_v25, %v661_v23  ;;  %v814_v23 = vld [vmem:[%s1628_s11 + $0x38] sm:$0xff]  ;;  %v1003_v25 = vld [vmem:[%s1630_s10] ss:$0 sm:$0xff] }
  0x15   :  { %1116 = vmatprep.mubr.msk.f32.mxu0 %vm65_vm0, %v52_v21  ;;  %v659_v21 = vld [vmem:[%s1625_s9] sm:$0xff] }
  0x18   :  { %1117 = vmatmul.mubr.msk.f32.gmra.mrb[6].mxu0 %vm65_vm0, %v53_v22  ;;  %v660_v22 = vld [vmem:[%s1625_s9 + $0x8] sm:$0xff] }
  0x19   :  { %v1267_v24 = vpack.c.bf16 %v660_v22, %v659_v21  ;;  %v813_v22 = vld [vmem:[%s1628_s11 + $0x30] sm:$0xff] }
  0x1b   :  { %1268 = vmatprep.subr.bf16.mxu0 %v1267_v24 }
  0xdf   :  { %v1109_v33 = vpop.f32.mrb[0].mxu0 }
  0xe0   :  { %v162_v34 = vadd.f32 %v1109_v33, %v967_v32  ;;  %v156_v35 = vpop.f32.mrb[1].mxu0 }
  0xe1   :  { %v157_v36 = vadd.f32 %v967_v32, %v156_v35 }
  0xe2   :  { %v196_v39 = vmax.f32 %v162_v34, 0.0 }
  0xe3   :  { %v195_v37 = vmax.f32 %v157_v36, 0.0  ;;  %v1112_v38 = vpop.f32.mrb[2].mxu0 }
  0xe4   :  { %v172_v40 = vadd.f32 %v1112_v38, %v967_v32  ;;  %v166_v41 = vpop.f32.mrb[3].mxu0 }
  0xe5   :  { %v167_v42 = vadd.f32 %v967_v32, %v166_v41  ;;  %1135 = vmatprep.mubr.msk.f32.mxu1 %vm218_vm1, %v195_v37 }
  0xe6   :  { %1136 = vmatmul.mubr.msk.f32.vlgmr.msra.gmra.mrb[0].mxu1 %vm218_vm1, %v196_v39  ;;  %v198_v45 = vmax.f32 %v172_v40, 0.0 }
  0xe7   :  { %v197_v43 = vmax.f32 %v167_v42, 0.0  ;;  %v1115_v44 = vpop.f32.mrb[4].mxu0  ;;  %1266 = vmatpush3.bf16.msra.mxu1 %v1263_v59  ;;  %v812_v59 = vld [vmem:[%s1628_s11 + $0x28] sm:$0xff] }
  0xe8   :  { %v182_v46 = vadd.f32 %v1115_v44, %v967_v32  ;;  %v176_v47 = vpop.f32.mrb[5].mxu0 }
  0xe9   :  { %v177_v48 = vadd.f32 %v967_v32, %v176_v47  ;;  %1138 = vmatprep.mubr.msk.f32.mxu1 %vm218_vm1, %v197_v43 }
  0xea   :  { %1139 = vmatmul.mubr.msk.f32.gmra.mrb[2].mxu1 %vm218_vm1, %v198_v45  ;;  %v200_v51 = vmax.f32 %v182_v46, 0.0 }
  0xeb   :  { %v199_v49 = vmax.f32 %v177_v48, 0.0  ;;  %v1118_v50 = vpop.f32.mrb[6].mxu0 }
  0xec   :  { %v192_v52 = vadd.f32 %v1118_v50, %v967_v32  ;;  %v186_v53 = vpop.f32.mrb[7].mxu0 }
  0xed   :  { %v187_v54 = vadd.f32 %v967_v32, %v186_v53  ;;  %1141 = vmatprep.mubr.msk.f32.mxu1 %vm218_vm1, %v199_v49  ;;  %v808_v53 = vld [vmem:[%s1628_s11 + $0x8] sm:$0xff] }
  0xee   :  { %1142 = vmatmul.mubr.msk.f32.gmra.mrb[4].mxu1 %vm218_vm1, %v200_v51  ;;  %v202_v56 = vmax.f32 %v192_v52, 0.0  ;;  %v807_v52 = vld [vmem:[%s1628_s11] sm:$0xff] }
  0xef   :  { %v201_v55 = vmax.f32 %v187_v54, 0.0  ;;  %v809_v54 = vld [vmem:[%s1628_s11 + $0x10] sm:$0xff] }
  0xf1   :  { %1144 = vmatprep.mubr.msk.f32.mxu1 %vm218_vm1, %v201_v55  ;;  %v1275_v55 = vpack.c.bf16 %v808_v53, %v807_v52 }
  0xf2   :  { %1145 = vmatmul.mubr.msk.f32.gmra.mrb[6].mxu1 %vm218_vm1, %v202_v56  ;;  %v810_v56 = vld [vmem:[%s1628_s11 + $0x18] sm:$0xff] }
  0xf3   :  { %1291 = vmatprep.subr.bf16.mxu1 %v1275_v55  ;;  %v1279_v57 = vpack.c.bf16 %v810_v56, %v809_v54 }
 0x1b9   :  { %v1137_v61 = vpop.f32.mrb[0].mxu1 }
 0x1ba   :  { %v315_v62 = vadd.f32 %v1137_v61, %v976_v60  ;;  %v309_v63 = vpop.f32.mrb[1].mxu1  ;;  %v994_v61 = vld [vmem:[%s1629_s8] ss:$0 sm:$0xff] }
 0x1bb   :  { %v310_v0 = vadd.f32 %v976_v60, %v309_v63 }
 0x1bc   :  { %v349_v3 = vmax.f32 %v315_v62, 0.0 }
 0x1bd   :  { %v348_v1 = vmax.f32 %v310_v0, 0.0  ;;  %v1140_v2 = vpop.f32.mrb[2].mxu1 }
 0x1be   :  { %v325_v4 = vadd.f32 %v1140_v2, %v976_v60  ;;  %v319_v5 = vpop.f32.mrb[3].mxu1 }
 0x1bf   :  { %v320_v6 = vadd.f32 %v976_v60, %v319_v5  ;;  %1155 = vmatprep.mubr.msk.f32.mxu0 %vm65_vm0, %v348_v1 }
 0x1c0   :  { %1156 = vmatmul.mubr.msk.f32.vlgmr.msra.gmra.mrb[8].mxu0 %vm65_vm0, %v349_v3  ;;  %v351_v9 = vmax.f32 %v325_v4, 0.0 }
 0x1c1   :  { %v350_v7 = vmax.f32 %v320_v6, 0.0  ;;  %v1143_v8 = vpop.f32.mrb[4].mxu1  ;;  %1270 = vmatpush3.bf16.msra.mxu0 %v1267_v24  ;;  %v1287_v24 = vpack.c.bf16 %v814_v23, %v813_v22 }
 0x1c2   :  { %v335_v10 = vadd.f32 %v1143_v8, %v976_v60  ;;  %v329_v11 = vpop.f32.mrb[5].mxu1  ;;  %1272 = vmatprep.subr.bf16.mxu0 %v1271_v26 }
 0x1c3   :  { %v330_v12 = vadd.f32 %v976_v60, %v329_v11  ;;  %1158 = vmatprep.mubr.msk.f32.mxu0 %vm65_vm0, %v350_v7 }
 0x1c4   :  { %1159 = vmatmul.mubr.msk.f32.gmra.mrb[10].mxu0 %vm65_vm0, %v351_v9  ;;  %v353_v15 = vmax.f32 %v335_v10, 0.0 }
 0x1c5   :  { %v352_v13 = vmax.f32 %v330_v12, 0.0  ;;  %v1146_v14 = vpop.f32.mrb[6].mxu1  ;;  %1274 = vmatpush3.bf16.msra.mxu0 %v1271_v26 }
 0x1c6   :  { %v345_v16 = vadd.f32 %v1146_v14, %v976_v60  ;;  %v339_v17 = vpop.f32.mrb[7].mxu1  ;;  %1276 = vmatprep.subr.bf16.mxu0 %v1275_v55 }
 0x1c7   :  { %v340_v18 = vadd.f32 %v976_v60, %v339_v17  ;;  %1161 = vmatprep.mubr.msk.f32.mxu0 %vm65_vm0, %v352_v13  ;;  %v1283_v60 = vpack.c.bf16 %v812_v59, %v811_v58 }
 0x1c8   :  { %1162 = vmatmul.mubr.msk.f32.gmra.mrb[12].mxu0 %vm65_vm0, %v353_v15  ;;  %v355_v20 = vmax.f32 %v345_v16, 0.0 }
 0x1c9   :  { %v354_v19 = vmax.f32 %v340_v18, 0.0 }
 0x1cb   :  { %1164 = vmatprep.mubr.msk.f32.mxu0 %vm65_vm0, %v354_v19 }
 0x1cc   :  { %1165 = vmatmul.mubr.msk.f32.gmra.mrb[14].mxu0 %vm65_vm0, %v355_v20 }
 0x293   :  { %v1157_v28 = vpop.f32.mrb[8].mxu0 }
 0x294   :  { %v463_v29 = vadd.f32 %v1157_v28, %v985_v27  ;;  %v457_v30 = vpop.f32.mrb[9].mxu0 }
 0x295   :  { %v458_v31 = vadd.f32 %v985_v27, %v457_v30 }
 0x296   :  { %v497_v32 = vmax.f32 %v463_v29, 0.0 }
 0x297   :  { %v496_v33 = vmax.f32 %v458_v31, 0.0  ;;  %v1160_v34 = vpop.f32.mrb[10].mxu0 }
 0x298   :  { %506 = vst.msk [vmem:[%s1627_s13 + $0x8] sm:$0xff] %vm504_vm2, %v497_v32  ;;  %v473_v35 = vadd.f32 %v1160_v34, %v985_v27  ;;  %v467_v36 = vpop.f32.mrb[11].mxu0 }
 0x299   :  { %505 = vst.msk [vmem:[%s1627_s13] sm:$0xff] %vm504_vm2, %v496_v33  ;;  %v468_v37 = vadd.f32 %v985_v27, %v467_v36  ;;  %1171 = vmatprep.mubr.msk.f32.mxu1 %vm504_vm2, %v496_v33 }
 0x29a   :  { %v499_v38 = vmax.f32 %v473_v35, 0.0  ;;  %1172 = vmatmul.mubr.msk.f32.vlgmr.msra.gmra.mrb[8].mxu1 %vm504_vm2, %v497_v32 }
 0x29b   :  { %v498_v39 = vmax.f32 %v468_v37, 0.0  ;;  %v1163_v40 = vpop.f32.mrb[12].mxu0  ;;  %1295 = vmatpush3.bf16.msra.mxu1 %v1275_v55 }
 0x29c   :  { %508 = vst.msk [vmem:[%s1627_s13 + $0x18] sm:$0xff] %vm504_vm2, %v499_v38  ;;  %v483_v41 = vadd.f32 %v1163_v40, %v985_v27  ;;  %v477_v42 = vpop.f32.mrb[13].mxu0  ;;  %1292 = vmatprep.subr.bf16.mxu1 %v1279_v57 }
 0x29d   :  { %507 = vst.msk [vmem:[%s1627_s13 + $0x10] sm:$0xff] %vm504_vm2, %v498_v39  ;;  %v478_v43 = vadd.f32 %v985_v27, %v477_v42  ;;  %1174 = vmatprep.mubr.msk.f32.mxu1 %vm504_vm2, %v498_v39 }
 0x29e   :  { %v501_v44 = vmax.f32 %v483_v41, 0.0  ;;  %1175 = vmatmul.mubr.msk.f32.gmra.mrb[10].mxu1 %vm504_vm2, %v499_v38 }
 0x29f   :  { %v500_v45 = vmax.f32 %v478_v43, 0.0  ;;  %v1166_v46 = vpop.f32.mrb[14].mxu0  ;;  %1296 = vmatpush3.bf16.msra.mxu1 %v1279_v57 }
 0x2a0   :  { %510 = vst.msk [vmem:[%s1627_s13 + $0x28] sm:$0xff] %vm504_vm2, %v501_v44  ;;  %v493_v47 = vadd.f32 %v1166_v46, %v985_v27  ;;  %v487_v48 = vpop.f32.mrb[15].mxu0  ;;  %1293 = vmatprep.subr.bf16.mxu1 %v1283_v60 }
 0x2a1   :  { %509 = vst.msk [vmem:[%s1627_s13 + $0x20] sm:$0xff] %vm504_vm2, %v500_v45  ;;  %v488_v49 = vadd.f32 %v985_v27, %v487_v48  ;;  %1177 = vmatprep.mubr.msk.f32.mxu1 %vm504_vm2, %v500_v45 }
 0x2a2   :  { %v503_v50 = vmax.f32 %v493_v47, 0.0  ;;  %1178 = vmatmul.mubr.msk.f32.gmra.mrb[12].mxu1 %vm504_vm2, %v501_v44 }
 0x2a3   :  { %v502_v51 = vmax.f32 %v488_v49, 0.0  ;;  %1297 = vmatpush3.bf16.msra.mxu1 %v1283_v60 }
 0x2a4   :  { %512 = vst.msk [vmem:[%s1627_s13 + $0x38] sm:$0xff] %vm504_vm2, %v503_v50  ;;  %1294 = vmatprep.subr.bf16.mxu1 %v1287_v24 }
 0x2a5   :  { %511 = vst.msk [vmem:[%s1627_s13 + $0x30] sm:$0xff] %vm504_vm2, %v502_v51  ;;  %1180 = vmatprep.mubr.msk.f32.mxu1 %vm504_vm2, %v502_v51 }
 0x2a6   :  { %1181 = vmatmul.mubr.msk.f32.gmra.mrb[14].mxu1 %vm504_vm2, %v503_v50  ;;  %v1012_v50 = vld [vmem:[%s1631_s12] ss:$0 sm:$0xff] }
 0x2a7   :  { %1298 = vmatpush3.bf16.msra.mxu1 %v1287_v24 }
 0x36d   :  { %v1173_v62 = vpop.f32.mrb[8].mxu1 }
 0x36e   :  { %v618_v63 = vadd.f32 %v1173_v62, %v994_v61  ;;  %v612_v0 = vpop.f32.mrb[9].mxu1 }
 0x36f   :  { %v613_v1 = vadd.f32 %v994_v61, %v612_v0 }
 0x370   :  { %v652_v4 = vmax.f32 %v618_v63, 0.0 }
 0x371   :  { %v651_v2 = vmax.f32 %v613_v1, 0.0  ;;  %v1176_v3 = vpop.f32.mrb[10].mxu1 }
 0x372   :  { %v628_v5 = vadd.f32 %v1176_v3, %v994_v61  ;;  %v622_v6 = vpop.f32.mrb[11].mxu1 }
 0x373   :  { %v623_v7 = vadd.f32 %v994_v61, %v622_v6  ;;  %1191 = vmatprep.mubr.msk.f32.mxu0 %vm65_vm0, %v651_v2 }
 0x374   :  { %1192 = vmatmul.mubr.msk.f32.vlgmr.msra.gmra.mrb[16].mxu0 %vm65_vm0, %v652_v4  ;;  %v654_v10 = vmax.f32 %v628_v5, 0.0 }
 0x375   :  { %v653_v8 = vmax.f32 %v623_v7, 0.0  ;;  %v1179_v9 = vpop.f32.mrb[12].mxu1  ;;  %1278 = vmatpush3.bf16.msra.mxu0 %v1275_v55 }
 0x376   :  { %v638_v11 = vadd.f32 %v1179_v9, %v994_v61  ;;  %v632_v12 = vpop.f32.mrb[13].mxu1  ;;  %1280 = vmatprep.subr.bf16.mxu0 %v1279_v57 }
 0x377   :  { %v633_v13 = vadd.f32 %v994_v61, %v632_v12  ;;  %1194 = vmatprep.mubr.msk.f32.mxu0 %vm65_vm0, %v653_v8 }
 0x378   :  { %1195 = vmatmul.mubr.msk.f32.gmra.mrb[18].mxu0 %vm65_vm0, %v654_v10  ;;  %v656_v16 = vmax.f32 %v638_v11, 0.0 }
 0x379   :  { %v655_v14 = vmax.f32 %v633_v13, 0.0  ;;  %v1182_v15 = vpop.f32.mrb[14].mxu1  ;;  %1282 = vmatpush3.bf16.msra.mxu0 %v1279_v57 }
 0x37a   :  { %v648_v17 = vadd.f32 %v1182_v15, %v994_v61  ;;  %v642_v18 = vpop.f32.mrb[15].mxu1  ;;  %1284 = vmatprep.subr.bf16.mxu0 %v1283_v60 }
 0x37b   :  { %v643_v19 = vadd.f32 %v994_v61, %v642_v18  ;;  %1197 = vmatprep.mubr.msk.f32.mxu0 %vm65_vm0, %v655_v14 }
 0x37c   :  { %1198 = vmatmul.mubr.msk.f32.gmra.mrb[20].mxu0 %vm65_vm0, %v656_v16  ;;  %v658_v21 = vmax.f32 %v648_v17, 0.0 }
 0x37d   :  { %v657_v20 = vmax.f32 %v643_v19, 0.0  ;;  %1286 = vmatpush3.bf16.msra.mxu0 %v1283_v60 }
 0x37e   :  { %1288 = vmatprep.subr.bf16.mxu0 %v1287_v24 }
 0x37f   :  { %1200 = vmatprep.mubr.msk.f32.mxu0 %vm65_vm0, %v657_v20 }
 0x380   :  { %1201 = vmatmul.mubr.msk.f32.gmra.mrb[22].mxu0 %vm65_vm0, %v658_v21 }
 0x381   :  { %1290 = vmatpush3.bf16.msra.mxu0 %v1287_v24 }
 0x447   :  { %v1193_v26 = vpop.f32.mrb[16].mxu0 }
 0x448   :  { %v766_v27 = vadd.f32 %v1193_v26, %v1003_v25  ;;  %v760_v28 = vpop.f32.mrb[17].mxu0 }
 0x449   :  { %v761_v29 = vadd.f32 %v1003_v25, %v760_v28 }
 0x44a   :  { %v800_v32 = vmax.f32 %v766_v27, 0.0 }
 0x44b   :  { %v799_v30 = vmax.f32 %v761_v29, 0.0  ;;  %v1196_v31 = vpop.f32.mrb[18].mxu0 }
 0x44c   :  { %v776_v33 = vadd.f32 %v1196_v31, %v1003_v25  ;;  %v770_v34 = vpop.f32.mrb[19].mxu0 }
 0x44d   :  { %v771_v35 = vadd.f32 %v1003_v25, %v770_v34  ;;  %1219 = vmatprep.mubr.msk.f32.mxu0 %vm218_vm1, %v799_v30 }
 0x44e   :  { %1220 = vmatmul.mubr.msk.f32.vlgmr.msra.gmra.mrb[24].mxu0 %vm218_vm1, %v800_v32  ;;  %v802_v38 = vmax.f32 %v776_v33, 0.0 }
 0x44f   :  { %v801_v36 = vmax.f32 %v771_v35, 0.0  ;;  %v1199_v37 = vpop.f32.mrb[20].mxu0 }
 0x450   :  { %v786_v39 = vadd.f32 %v1199_v37, %v1003_v25  ;;  %v780_v40 = vpop.f32.mrb[21].mxu0 }
 0x451   :  { %v781_v41 = vadd.f32 %v1003_v25, %v780_v40  ;;  %1222 = vmatprep.mubr.msk.f32.mxu1 %vm218_vm1, %v801_v36 }
 0x452   :  { %1223 = vmatmul.mubr.msk.f32.vlgmr.msra.gmra.mrb[16].mxu1 %vm218_vm1, %v802_v38  ;;  %v804_v44 = vmax.f32 %v786_v39, 0.0 }
 0x453   :  { %v803_v42 = vmax.f32 %v781_v41, 0.0  ;;  %v1202_v43 = vpop.f32.mrb[22].mxu0 }
 0x454   :  { %v796_v45 = vadd.f32 %v1202_v43, %v1003_v25  ;;  %v790_v46 = vpop.f32.mrb[23].mxu0 }
 0x455   :  { %v791_v47 = vadd.f32 %v1003_v25, %v790_v46  ;;  %1225 = vmatprep.mubr.msk.f32.mxu1 %vm218_vm1, %v803_v42 }
 0x456   :  { %1226 = vmatmul.mubr.msk.f32.gmra.mrb[18].mxu1 %vm218_vm1, %v804_v44  ;;  %v806_v49 = vmax.f32 %v796_v45, 0.0 }
 0x457   :  { %v805_v48 = vmax.f32 %v791_v47, 0.0 }
 0x459   :  { %1228 = vmatprep.mubr.msk.f32.mxu1 %vm218_vm1, %v805_v48 }
 0x45a   :  { %1229 = vmatmul.mubr.msk.f32.gmra.mrb[20].mxu1 %vm218_vm1, %v806_v49 }
 0x521   :  { %v1221_v51 = vpop.f32.mrb[24].mxu0 }
 0x522   :  { %v918_v52 = vadd.f32 %v1221_v51, %v1012_v50  ;;  %v912_v53 = vpop.f32.mrb[25].mxu0 }
 0x523   :  { %v913_v54 = vadd.f32 %v1012_v50, %v912_v53 }
 0x524   :  { %952 = vst.msk [vmem:[%s1632_s14 + $0x8] sm:$0xff] %vm65_vm0, %v918_v52 }
 0x525   :  { %951 = vst.msk [vmem:[%s1632_s14] sm:$0xff] %vm65_vm0, %v913_v54  ;;  %v1224_v55 = vpop.f32.mrb[16].mxu1 }
 0x526   :  { %v928_v56 = vadd.f32 %v1224_v55, %v1012_v50  ;;  %v922_v57 = vpop.f32.mrb[17].mxu1 }
 0x527   :  { %v923_v58 = vadd.f32 %v1012_v50, %v922_v57 }
 0x528   :  { %954 = vst.msk [vmem:[%s1632_s14 + $0x18] sm:$0xff] %vm65_vm0, %v928_v56 }
 0x529   :  { %953 = vst.msk [vmem:[%s1632_s14 + $0x10] sm:$0xff] %vm65_vm0, %v923_v58  ;;  %v1227_v59 = vpop.f32.mrb[18].mxu1 }
 0x52a   :  { %v938_v60 = vadd.f32 %v1227_v59, %v1012_v50  ;;  %v932_v61 = vpop.f32.mrb[19].mxu1 }
 0x52b   :  { %v933_v62 = vadd.f32 %v1012_v50, %v932_v61 }
 0x52c   :  { %956 = vst.msk [vmem:[%s1632_s14 + $0x28] sm:$0xff] %vm65_vm0, %v938_v60 }
 0x52d   :  { %955 = vst.msk [vmem:[%s1632_s14 + $0x20] sm:$0xff] %vm65_vm0, %v933_v62  ;;  %v1230_v63 = vpop.f32.mrb[20].mxu1 }
 0x52e   :  { %v948_v0 = vadd.f32 %v1230_v63, %v1012_v50  ;;  %v942_v1 = vpop.f32.mrb[21].mxu1 }
 0x52f   :  { %v943_v2 = vadd.f32 %v1012_v50, %v942_v1 }
 0x530   :  { %958 = vst.msk [vmem:[%s1632_s14 + $0x38] sm:$0xff] %vm65_vm0, %v948_v0 }
 0x531   :  { %957 = vst.msk [vmem:[%s1632_s14 + $0x30] sm:$0xff] %vm65_vm0, %v943_v2 }

</bundles_post_ra>
